<compile_context>
chip_gen: v7x
topology: tpu7x:2x2x1
jax: 0.10.0
libtpu: 0.0.40
codegen_flags: <defaults>
</compile_context>

<pallas_src>
import functools

import numpy as np
import jax
import jax.numpy as jnp
from jax.experimental import pallas as pl
from jax.experimental.pallas import tpu as pltpu


def _round_up(x, m):
    return (x + m - 1) // m * m


def _vmem_limit_bytes():
    """Generation-aware VMEM budget: 3/4 of physical per-core VMEM."""
    cap = 64 * 1024 * 1024                       # conservative fallback (v7x per-TC)
    try:
        info = pltpu.get_tpu_info()
        cap = int(getattr(info, "vmem_capacity_bytes", cap)) or cap
    except Exception:
        pass
    return (cap * 3) // 4                        # ~96 MiB on 128 MiB parts, ~48 MiB on v7x


def _pick_batch_tile(batch, d_in, layer_dims, x_itemsize, compute_itemsize,
                     vmem_limit, weight_buffers):
    """Largest batch tile whose full VMEM footprint fits under vmem_limit."""
    d_out = layer_dims[-1][1]
    # Sublane alignment for the batch axis: f32 -> 8, bf16 -> 16, int8 -> 32.
    align = max(8, 32 // int(x_itemsize))
    resident = sum(weight_buffers * (di * do * compute_itemsize + do * 4)
                   for di, do in layer_dims)
    widths = [d_in] + [do for _, do in layer_dims]
    scratch_allowance = 2 * 1024 * 1024          # Mosaic internal scratch headroom

    def usage(tb):
        u = resident + scratch_allowance
        u += 2 * tb * d_in * x_itemsize          # double-buffered x tile
        u += 2 * tb * d_out * 4                  # double-buffered out tile (f32)
        u += tb * max(widths) * (compute_itemsize + 4)   # in-kernel temporaries
        return u

    tb = 1024
    while tb > align and usage(tb) > vmem_limit:
        tb //= 2
    tb = max(tb, align)
    if usage(tb) > vmem_limit:
        # TODO(synk): tile the first-layer matmul over K/N with an f32
        # accumulator (pl.when init/finalize) instead of keeping the whole
        # weight resident, so huge (d_in x d_mid) probes fit v7x's 64 MiB VMEM.
        raise NotImplementedError(
            "Probe weights do not fit in VMEM; K/N weight tiling not implemented.")

    # Keep >=4 grid steps (double-buffering of the x DMA + both v7x TCs busy)
    # once the batch is big enough that tiles stay >=128 rows.
    cap = max(128, _round_up(pl.cdiv(batch, 4), align))
    if batch > cap:
        tb = min(tb, cap)
    # Never tile beyond the batch itself; a full-batch block is always legal.
    if tb >= batch:
        tb = batch
    return tb


def _probe_kernel(*refs, num_layers, compute_dtype):
    """Fused chain of Linear layers followed by a row-wise softmax.

    refs = (x_ref, w_0, b_0, ..., w_{L-1}, b_{L-1}, o_ref)
      x_ref: (TB, d_in)  native input dtype
      w_i  : (d_in_i, d_out_i) compute_dtype    (resident in VMEM)
      b_i  : (1, d_out_i) float32
      o_ref: (TB, d_out) float32
    """
    x_ref = refs[0]
    o_ref = refs[1 + 2 * num_layers]

    # Per-tile cast to the MXU compute dtype (free under the mem-bound regime;
    # avoids a wrapper-side bf16 copy of x through HBM).
    h = x_ref[...].astype(compute_dtype)
    for i in range(num_layers):
        w_ref = refs[1 + 2 * i]
        b_ref = refs[2 + 2 * i]
        logits = (jnp.dot(h, w_ref[...], preferred_element_type=jnp.float32)
                  + b_ref[...])
        if i < num_layers - 1:
            # The reference module has no nonlinearity between linears.
            h = logits.astype(compute_dtype)
        else:
            # Numerically stable row-wise softmax, kept in f32 (exact division
            # so rows sum to 1 to float rounding).
            m = jnp.max(logits, axis=1, keepdims=True)
            e = jnp.exp(logits - m)
            o_ref[...] = (e / jnp.sum(e, axis=1, keepdims=True)).astype(o_ref.dtype)


# Feature flag: single-buffered resident weights via pipeline_mode=pl.Buffered(1).
# Flipped off (once, globally) if the installed jax rejects it.
_WEIGHT_SINGLE_BUFFER_OK = True


def probe_forward(x, params, *, compute_dtype=jnp.bfloat16):
    """Run the full Probe forward pass in a single batch-tiled pallas_call.

    compute_dtype controls the matmul input precision (bf16 by default; pass
    jnp.float32 for exact parity with the f32 PyTorch module). Accumulation
    and the softmax are always float32.
    """
    global _WEIGHT_SINGLE_BUFFER_OK

    batch, d_in = x.shape
    num_layers = len(params)
    layer_dims = [tuple(w.shape) for (w, _) in params]
    d_out = layer_dims[-1][1]

    compute_itemsize = jnp.dtype(compute_dtype).itemsize
    x_itemsize = int(x.dtype.itemsize)
    vmem_limit = _vmem_limit_bytes()

    weight_buffers = 1 if _WEIGHT_SINGLE_BUFFER_OK else 2
    tb = _pick_batch_tile(batch, d_in, layer_dims, x_itemsize, compute_itemsize,
                          vmem_limit, weight_buffers)
    grid = (pl.cdiv(batch, tb),)

    inputs = [x]                                 # native dtype; cast per tile in-kernel
    flops = 0
    bytes_accessed = batch * d_in * x_itemsize + batch * d_out * 4
    for (w, b) in params:
        di, do = w.shape
        inputs.append(w.astype(compute_dtype))   # no-op when pre-cast at init
        inputs.append(b.astype(jnp.float32).reshape(1, do))
        flops += 2 * batch * di * do
        bytes_accessed += di * do * compute_itemsize + do * 4
    transcendentals = batch * d_out

    kernel = functools.partial(_probe_kernel, num_layers=num_layers,
                               compute_dtype=compute_dtype)

    def make_call(single_buffer_weights):
        w_kwargs = {"pipeline_mode": pl.Buffered(1)} if single_buffer_weights else {}
        in_specs = [pl.BlockSpec((tb, d_in), lambda i: (i, 0))]
        for di, do in layer_dims:
            in_specs.append(pl.BlockSpec((di, do), lambda i: (0, 0), **w_kwargs))
            in_specs.append(pl.BlockSpec((1, do), lambda i: (0, 0), **w_kwargs))
        out_specs = pl.BlockSpec((tb, d_out), lambda i: (i, 0))
        return pl.pallas_call(
            kernel,
            out_shape=jax.ShapeDtypeStruct((batch, d_out), jnp.float32),
            grid=grid,
            in_specs=in_specs,
            out_specs=out_specs,
            compiler_params=pltpu.CompilerParams(
                dimension_semantics=("parallel",),
                vmem_limit_bytes=int(vmem_limit),
            ),
            cost_estimate=pl.CostEstimate(
                flops=int(flops),
                transcendentals=int(transcendentals),
                bytes_accessed=int(bytes_accessed),
            ),
        )

    if _WEIGHT_SINGLE_BUFFER_OK:
        try:
            return make_call(True)(*inputs)
        except Exception:
            # Buffered(1) not supported by this jax build; fall back once.
            _WEIGHT_SINGLE_BUFFER_OK = False
    return make_call(False)(*inputs)


class ProbePallas:
    """JAX/Pallas re-implementation of the PyTorch `Probe` module."""

    def __init__(self, input_size, num_layers=1, key=None,
                 compute_dtype=jnp.bfloat16):
        if key is None:
            key = jax.random.PRNGKey(0)
        self.compute_dtype = compute_dtype
        layer_sizes = np.linspace(input_size, 16, num_layers + 1, dtype=int)
        self.params = []                          # f32 master copy (reference math)
        for i in range(num_layers):
            d_in, d_out = int(layer_sizes[i]), int(layer_sizes[i + 1])
            key, wk, bk = jax.random.split(key, 3)
            # Mimic nn.Linear's uniform(-1/sqrt(in), 1/sqrt(in)) init.
            bound = 1.0 / np.sqrt(d_in)
            w = jax.random.uniform(
                wk, (d_in, d_out), jnp.float32, minval=-bound, maxval=bound)
            b = jax.random.uniform(
                bk, (1, d_out), jnp.float32, minval=-bound, maxval=bound)
            self.params.append((w, b))
        # Cast once at construction (not per forward call).
        self.cast_params = [(w.astype(compute_dtype), b.astype(jnp.float32))
                            for (w, b) in self.params]

    def __call__(self, x):
        return probe_forward(x, self.cast_params, compute_dtype=self.compute_dtype)


def probe_reference(x, params, compute_dtype=jnp.bfloat16):
    """Pure-JAX reference matching the kernel's bf16-input / f32-accum math."""
    h = x.astype(compute_dtype)
    for i, (w, b) in enumerate(params):
        logits = (jnp.dot(h, w.astype(compute_dtype),
                          preferred_element_type=jnp.float32) + b)
        if i < len(params) - 1:
            h = logits.astype(compute_dtype)
        else:
            return jax.nn.softmax(logits, axis=1)
    return h


def probe_reference_f32(x, params):
    """Full-precision reference (matches the original PyTorch module's math)."""
    h = x
    for i, (w, b) in enumerate(params):
        h = h @ w + b
        if i == len(params) - 1:
            h = jax.nn.softmax(h, axis=1)
    return h


if __name__ == "__main__":
    key = jax.random.PRNGKey(0)
    batch, input_size = 8, 32

    xkey, p1key, p2key, x3key, p3key = jax.random.split(key, 5)
    x = jax.random.normal(xkey, (batch, input_size), jnp.float32)

    # --- num_layers = 1 (the default Probe) ---
    model = ProbePallas(input_size=input_size, num_layers=1, key=p1key)
    out = jax.block_until_ready(model(x))
    assert out.shape == (batch, 16)

    ref_bf16 = probe_reference(x, model.params)
    np.testing.assert_allclose(
        np.asarray(out), np.asarray(ref_bf16), rtol=2e-3, atol=2e-3)
    ref_f32 = probe_reference_f32(x, model.params)
    np.testing.assert_allclose(
        np.asarray(out), np.asarray(ref_f32), rtol=5e-2, atol=5e-2)
    np.testing.assert_allclose(
        np.asarray(out).sum(axis=1), np.ones(batch), rtol=1e-5, atol=1e-5)

    # --- num_layers = 2 (exercises the fused multi-layer path) ---
    model2 = ProbePallas(input_size=input_size, num_layers=2, key=p2key)
    out2 = jax.block_until_ready(model2(x))
    assert out2.shape == (batch, 16)
    ref2 = probe_reference(x, model2.params)
    np.testing.assert_allclose(
        np.asarray(out2), np.asarray(ref2), rtol=2e-3, atol=2e-3)
    np.testing.assert_allclose(
        np.asarray(out2).sum(axis=1), np.ones(batch), rtol=1e-5, atol=1e-5)

    # --- ragged batch (not a multiple of the tile; multi-step grid, masked
    #     last block, no padding or wrapper-side casts of x) ---
    batch3, in3 = 200, 48
    x3 = jax.random.normal(x3key, (batch3, in3), jnp.float32)
    model3 = ProbePallas(input_size=in3, num_layers=2, key=p3key)
    out3 = jax.block_until_ready(model3(x3))
    assert out3.shape == (batch3, 16)
    ref3 = probe_reference(x3, model3.params)
    np.testing.assert_allclose(
        np.asarray(out3), np.asarray(ref3), rtol=2e-3, atol=2e-3)
    np.testing.assert_allclose(
        np.asarray(out3).sum(axis=1), np.ones(batch3), rtol=1e-5, atol=1e-5)

    print("KERNEL_OK")
</pallas_src>

<mosaic_0001>
module attributes {stable_mosaic.version = 11 : i64} {
  func.func @_probe_kernel(%arg0: i32, %arg1: memref<8x32xf32, #tpu.memory_space<vmem>>, %arg2: memref<32x16xbf16, #tpu.memory_space<vmem>>, %arg3: memref<1x16xf32, #tpu.memory_space<vmem>>, %arg4: memref<8x16xf32, #tpu.memory_space<vmem>>) attributes {dimension_semantics = [#tpu.dimension_semantics<parallel>], iteration_bounds = array<i64: 1>, scalar_prefetch = 0 : i64, scratch_operands = 0 : i64, tpu.core_type = #tpu.core_type<tc>, window_params = [{transform_indices = @transform_0, window_bounds = array<i64: 8, 32>}, {pipeline_mode = #tpu.pipeline_mode<synchronous>, transform_indices = @transform_1, window_bounds = array<i64: 32, 16>}, {pipeline_mode = #tpu.pipeline_mode<synchronous>, transform_indices = @transform_2, window_bounds = array<i64: 1, 16>}, {transform_indices = @transform_3, window_bounds = array<i64: 8, 16>}]} {
    %c0 = arith.constant 0 : index
    %c0_0 = arith.constant 0 : index
    %0 = vector.load %arg1[%c0, %c0_0] : memref<8x32xf32, #tpu.memory_space<vmem>>, vector<8x32xf32>
    %1 = arith.truncf %0 : vector<8x32xf32> to vector<8x32xbf16>
    %c0_1 = arith.constant 0 : index
    %c0_2 = arith.constant 0 : index
    %2 = vector.load %arg2[%c0_1, %c0_2] : memref<32x16xbf16, #tpu.memory_space<vmem>>, vector<32x16xbf16>
    %cst = arith.constant dense<0.000000e+00> : vector<8x16xf32>
    %3 = tpu.matmul %1, %2, %cst {dimension_numbers = #tpu.dot_dimension_numbers<[1], [0], [0], [1], [0, 0, 1, 1], [], []>} : vector<8x32xbf16>, vector<32x16xbf16>, vector<8x16xf32> -> vector<8x16xf32>
    %c0_3 = arith.constant 0 : index
    %c0_4 = arith.constant 0 : index
    %4 = vector.load %arg3[%c0_3, %c0_4] : memref<1x16xf32, #tpu.memory_space<vmem>>, vector<1x16xf32>
    %5 = vector.broadcast %4 : vector<1x16xf32> to vector<8x16xf32>
    %6 = arith.addf %3, %5 : vector<8x16xf32>
    %cst_5 = arith.constant dense<0xFF800000> : vector<8xf32>
    %7 = vector.multi_reduction <maximumf>, %6, %cst_5 [1] : vector<8x16xf32> to vector<8xf32>
    %8 = vector.shape_cast %7 : vector<8xf32> to vector<8x1xf32>
    %9 = vector.broadcast %8 : vector<8x1xf32> to vector<8x16xf32>
    %10 = arith.subf %6, %9 : vector<8x16xf32>
    %11 = math.exp %10 : vector<8x16xf32>
    %cst_6 = arith.constant dense<0.000000e+00> : vector<8xf32>
    %12 = vector.multi_reduction <add>, %11, %cst_6 [1] : vector<8x16xf32> to vector<8xf32>
    %13 = vector.shape_cast %12 : vector<8xf32> to vector<8x1xf32>
    %14 = vector.broadcast %13 : vector<8x1xf32> to vector<8x16xf32>
    %15 = arith.divf %11, %14 : vector<8x16xf32>
    %c0_7 = arith.constant 0 : index
    %c0_8 = arith.constant 0 : index
    %16 = vector.load %arg4[%c0_7, %c0_8] : memref<8x16xf32, #tpu.memory_space<vmem>>, vector<8x16xf32>
    tpu.vector_store %arg4[%c0_7, %c0_8], %15 {strides = array<i32>} : memref<8x16xf32, #tpu.memory_space<vmem>>, vector<8x16xf32>,
    return
  }
  func.func @transform_0(%arg0: i32) -> (i32, i32) {
    %c0_i32 = arith.constant 0 : i32
    %c0_i32_0 = arith.constant 0 : i32
    return %arg0, %c0_i32 : i32, i32
  }
  func.func @transform_1(%arg0: i32) -> (i32, i32) {
    %c0_i32 = arith.constant 0 : i32
    %c0_i32_0 = arith.constant 0 : i32
    %c0_i32_1 = arith.constant 0 : i32
    return %c0_i32, %c0_i32_0 : i32, i32
  }
  func.func @transform_2(%arg0: i32) -> (i32, i32) {
    %c0_i32 = arith.constant 0 : i32
    %c0_i32_0 = arith.constant 0 : i32
    %c0_i32_1 = arith.constant 0 : i32
    return %c0_i32, %c0_i32_0 : i32, i32
  }
  func.func @transform_3(%arg0: i32) -> (i32, i32) {
    %c0_i32 = arith.constant 0 : i32
    %c0_i32_0 = arith.constant 0 : i32
    return %arg0, %c0_i32 : i32, i32
  }
}

module attributes {stable_mosaic.version = 11 : i64} {
  func.func @_probe_kernel(%arg0: i32, %arg1: memref<8x32xf32, #tpu.memory_space<vmem>>, %arg2: memref<32x16xbf16, #tpu.memory_space<vmem>>, %arg3: memref<1x16xf32, #tpu.memory_space<vmem>>, %arg4: memref<8x16xf32, #tpu.memory_space<vmem>>) attributes {dimension_semantics = [#tpu.dimension_semantics<parallel>], iteration_bounds = array<i64: 1>, scalar_prefetch = 0 : i64, scratch_operands = 0 : i64, tpu.core_type = #tpu.core_type<tc>, window_params = [{transform_indices = @transform_0, window_bounds = array<i64: 8, 32>}, {pipeline_mode = #tpu.pipeline_mode<synchronous>, transform_indices = @transform_1, window_bounds = array<i64: 32, 16>}, {pipeline_mode = #tpu.pipeline_mode<synchronous>, transform_indices = @transform_2, window_bounds = array<i64: 1, 16>}, {transform_indices = @transform_3, window_bounds = array<i64: 8, 16>}]} {
    %c0 = arith.constant 0 : index
    %c0_0 = arith.constant 0 : index
    %0 = vector.load %arg1[%c0, %c0_0] : memref<8x32xf32, #tpu.memory_space<vmem>>, vector<8x32xf32>
    %1 = arith.truncf %0 : vector<8x32xf32> to vector<8x32xbf16>
    %c0_1 = arith.constant 0 : index
    %c0_2 = arith.constant 0 : index
    %2 = vector.load %arg2[%c0_1, %c0_2] : memref<32x16xbf16, #tpu.memory_space<vmem>>, vector<32x16xbf16>
    %cst = arith.constant dense<0.000000e+00> : vector<8x16xf32>
    %3 = tpu.matmul %1, %2, %cst {dimension_numbers = #tpu.dot_dimension_numbers<[1], [0], [0], [1], [0, 0, 1, 1], [], []>} : vector<8x32xbf16>, vector<32x16xbf16>, vector<8x16xf32> -> vector<8x16xf32>
    %c0_3 = arith.constant 0 : index
    %c0_4 = arith.constant 0 : index
    %4 = vector.load %arg3[%c0_3, %c0_4] : memref<1x16xf32, #tpu.memory_space<vmem>>, vector<1x16xf32>
    %5 = vector.broadcast %4 : vector<1x16xf32> to vector<8x16xf32>
    %6 = arith.addf %3, %5 : vector<8x16xf32>
    %cst_5 = arith.constant dense<0xFF800000> : vector<8xf32>
    %7 = vector.multi_reduction <maximumf>, %6, %cst_5 [1] : vector<8x16xf32> to vector<8xf32>
    %8 = vector.shape_cast %7 : vector<8xf32> to vector<8x1xf32>
    %9 = vector.broadcast %8 : vector<8x1xf32> to vector<8x16xf32>
    %10 = arith.subf %6, %9 : vector<8x16xf32>
    %11 = math.exp %10 : vector<8x16xf32>
    %cst_6 = arith.constant dense<0.000000e+00> : vector<8xf32>
    %12 = vector.multi_reduction <add>, %11, %cst_6 [1] : vector<8x16xf32> to vector<8xf32>
    %13 = vector.shape_cast %12 : vector<8xf32> to vector<8x1xf32>
    %14 = vector.broadcast %13 : vector<8x1xf32> to vector<8x16xf32>
    %15 = arith.divf %11, %14 : vector<8x16xf32>
    %c0_7 = arith.constant 0 : index
    %c0_8 = arith.constant 0 : index
    %16 = vector.load %arg4[%c0_7, %c0_8] : memref<8x16xf32, #tpu.memory_space<vmem>>, vector<8x16xf32>
    tpu.vector_store %arg4[%c0_7, %c0_8], %15 {strides = array<i32>} : memref<8x16xf32, #tpu.memory_space<vmem>>, vector<8x16xf32>,
    return
  }
  func.func @transform_0(%arg0: i32) -> (i32, i32) {
    %c0_i32 = arith.constant 0 : i32
    %c0_i32_0 = arith.constant 0 : i32
    return %arg0, %c0_i32 : i32, i32
  }
  func.func @transform_1(%arg0: i32) -> (i32, i32) {
    %c0_i32 = arith.constant 0 : i32
    %c0_i32_0 = arith.constant 0 : i32
    %c0_i32_1 = arith.constant 0 : i32
    return %c0_i32, %c0_i32_0 : i32, i32
  }
  func.func @transform_2(%arg0: i32) -> (i32, i32) {
    %c0_i32 = arith.constant 0 : i32
    %c0_i32_0 = arith.constant 0 : i32
    %c0_i32_1 = arith.constant 0 : i32
    return %c0_i32, %c0_i32_0 : i32, i32
  }
  func.func @transform_3(%arg0: i32) -> (i32, i32) {
    %c0_i32 = arith.constant 0 : i32
    %c0_i32_0 = arith.constant 0 : i32
    return %arg0, %c0_i32 : i32, i32
  }
}

</mosaic_0001>

<bundles_post_ra>
// kernel: tpu_custom_call.1
= control target key start
LH: loop header
LB: loop body
LE: loop exit
PB: predicated region body
PF: predicated region fallthrough
CT: control target
= control target key end

     0   :  { %v160_v1 = vmov 0.0   ;;  %vm161_vm0 = vmmov 0   ;;  %s210_s0 = inlined_call_operand.vmem [shape: f32[8,32], index: 0, kind: input, shape index: {}]   ;;  %s211_s1 = inlined_call_operand.vmem [shape: bf16[32,16], index: 1, kind: input, shape index: {}]   ;;  %s212_s2 = inlined_call_operand.vmem [shape: f32[1,16], index: 2, kind: input, shape index: {}]   ;;  %s213_s3 = inlined_call_operand.hbm [shape: f32[8,16], index: 3, kind: output, shape index: {}]  }
   0x1   :  { %v130_v0 = vld [vmem:[%s211_s1] sm:$0xff]   ;;  %119 = vmatprep.subr.bf16.mxu0 %v160_v1  ;;  %v131_v2 = vld [vmem:[%s211_s1 + $0x8] sm:$0xff]   ;;  %123 = vmatprep.mubr.msk.bf16.mxu0 %vm161_vm0, %v160_v1 }
   0x2   :  { %120 = vmatpush3.bf16.msra.mxu0 %v130_v0  ;;  %v16_v3 = vld [vmem:[%s210_s0] sm:$0xff] }
   0x3   :  { %8 = vsyncpa [#allocation3], 0  ;;  %121 = vmatprep.subr.bf16.mxu0 %v160_v1  ;;  %v17_v4 = vpack.c.bf16 %v16_v3, %v16_v3  ;;  %vm41_vm1 = vcmask 261120   ;;  %v112_v5 = vld [vmem:[%s212_s2] ss:$0 sm:$0xff]  ;;  %vm85_vm2 = vcmask 130048  }
   0x4   :  { %s162_s0 = smov [#allocation2]  }
   0x5   :  { %s104_s1 = sshll.u32 %s162_s0, 4  ;;  %s105_s1 = int_to_ptr.vmem [resolvable:$true] %s104_s1 }
   0x6   :  { %122 = vmatpush3.bf16.msra.mxu0 %v131_v2  ;;  %s136_s2 = scalar_lea.vmem %s105_s1, 128  ;;  %p141_p1 = scmp.lt.s32.totalorder %s105_s1, %s105_s1 }
   0x7   :  { %p137_p0 = scmp.ne.s32.totalorder %s105_s1, %s136_s2  ;;  %p142_p2 = scmp.lt.s32.totalorder %s136_s2, %s136_s2 }
   0x9   :  { %124 = vmatmul.mubr.msk.bf16.vlgmr.msra.gmra.mrb[0].mxu0 %vm41_vm1, %v17_v4  ;;  %p143_p3 = por %p142_p2, %p141_p1 }
   0xb   :  { %p144_p4 = pnand %p143_p3, %p137_p0 }
  0xdc   :  { %v79_v6 = vpop.f32.mrb[0].mxu0 }
  0xdd   :  { %v80_v7 = vadd.f32 %v112_v5, %v79_v6  ;;  %v125_v8 = vpop.f32.mrb[1].mxu0 }
  0xde   :  { %v82_v9 = vpop.f32.mrb[2].mxu0 }
  0xdf   :  { %v126_v10 = vpop.f32.mrb[3].mxu0  ;;  %v86_v11 = vsel %vm85_vm2, %v80_v7, -inf }
  0xe0   :  { %87 = vmax.xlane.f32.xlu0 %v86_v11 }
 0x16d   :  { %v88_v12 = vpop.xlane.xlu0 %87 }
 0x16e   :  { %v89_v13 = vsub.f32 %v80_v7, %v88_v12 }
 0x170   :  { %v90_v14 = vmul.f32 1.442695, %v89_v13 }
 0x172   :  { %132 = vpow2.f32 %v90_v14 }
 0x17c   :  { %v133_v15 = vpop.eup %132 }
 0x17d   :  { %v92_v16 = vsel %vm85_vm2, %v133_v15, 0.0 }
 0x17e   :  { %93 = vadd.xlane.f32.xlu0 %v92_v16 }
 0x20b   :  { %v94_v17 = vpop.xlane.xlu0 %93 }
 0x20c   :  { %134 = vrcp.f32 %v94_v17 }
 0x216   :  { %v135_v18 = vpop.eup %134 }
 0x217   :  { %v96_v19 = vmul.f32 %v135_v18, %v133_v15 }
 0x219   :  { %97 = vst.msk [vmem:[#allocation2] sm:$0xff] %vm85_vm2, %v96_v19 }
 0x21a   :  { %147 = shalt.err (!%p144_p4)
}
 0x21b   :  { %s148_s22 = scalar_lea.hbm %s213_s3, 128 }
 0x21c   :  { %p149_p5 = scmp.ne.s32.totalorder %s213_s3, %s148_s22  ;;  %p152_p6 = scmp.lt.u32.totalorder %s148_s22, %s213_s3 }
 0x21e   :  { %p154_p7 = pnand %p152_p6, %p149_p5 }
 0x220   :  { %157 = shalt.err (!%p154_p7)
}
 0x221   :  { %107 = dma.vmem_to_hbm [thread:$0]  %s105_s1, 128, %s213_s3, [#allocation3]  }
 0x222   :  { %158 = dma.done.wait [#allocation3], 128  }
 0x223   :  { %159 = vsyncadd [#allocation3], 4294967168 }
 0x224   :  { %111 = vsyncpa [#allocation3], 1 }

// kernel: tpu_custom_call.1
= control target key start
LH: loop header
LB: loop body
LE: loop exit
PB: predicated region body
PF: predicated region fallthrough
CT: control target
= control target key end

     0   :  { %v160_v1 = vmov 0.0   ;;  %vm161_vm0 = vmmov 0   ;;  %s210_s0 = inlined_call_operand.vmem [shape: f32[8,32], index: 0, kind: input, shape index: {}]   ;;  %s211_s1 = inlined_call_operand.vmem [shape: bf16[32,16], index: 1, kind: input, shape index: {}]   ;;  %s212_s2 = inlined_call_operand.vmem [shape: f32[1,16], index: 2, kind: input, shape index: {}]   ;;  %s213_s3 = inlined_call_operand.hbm [shape: f32[8,16], index: 3, kind: output, shape index: {}]  }
   0x1   :  { %v130_v0 = vld [vmem:[%s211_s1] sm:$0xff]   ;;  %119 = vmatprep.subr.bf16.mxu0 %v160_v1  ;;  %v131_v2 = vld [vmem:[%s211_s1 + $0x8] sm:$0xff]   ;;  %123 = vmatprep.mubr.msk.bf16.mxu0 %vm161_vm0, %v160_v1 }
   0x2   :  { %120 = vmatpush3.bf16.msra.mxu0 %v130_v0  ;;  %v16_v3 = vld [vmem:[%s210_s0] sm:$0xff] }
   0x3   :  { %8 = vsyncpa [#allocation3], 0  ;;  %121 = vmatprep.subr.bf16.mxu0 %v160_v1  ;;  %v17_v4 = vpack.c.bf16 %v16_v3, %v16_v3  ;;  %vm41_vm1 = vcmask 261120   ;;  %v112_v5 = vld [vmem:[%s212_s2] ss:$0 sm:$0xff]  ;;  %vm85_vm2 = vcmask 130048  }
   0x4   :  { %s162_s0 = smov [#allocation2]  }
   0x5   :  { %s104_s1 = sshll.u32 %s162_s0, 4  ;;  %s105_s1 = int_to_ptr.vmem [resolvable:$true] %s104_s1 }
   0x6   :  { %122 = vmatpush3.bf16.msra.mxu0 %v131_v2  ;;  %s136_s2 = scalar_lea.vmem %s105_s1, 128  ;;  %p141_p1 = scmp.lt.s32.totalorder %s105_s1, %s105_s1 }
   0x7   :  { %p137_p0 = scmp.ne.s32.totalorder %s105_s1, %s136_s2  ;;  %p142_p2 = scmp.lt.s32.totalorder %s136_s2, %s136_s2 }
   0x9   :  { %124 = vmatmul.mubr.msk.bf16.vlgmr.msra.gmra.mrb[0].mxu0 %vm41_vm1, %v17_v4  ;;  %p143_p3 = por %p142_p2, %p141_p1 }
   0xb   :  { %p144_p4 = pnand %p143_p3, %p137_p0 }
  0xdc   :  { %v79_v6 = vpop.f32.mrb[0].mxu0 }
  0xdd   :  { %v80_v7 = vadd.f32 %v112_v5, %v79_v6  ;;  %v125_v8 = vpop.f32.mrb[1].mxu0 }
  0xde   :  { %v82_v9 = vpop.f32.mrb[2].mxu0 }
  0xdf   :  { %v126_v10 = vpop.f32.mrb[3].mxu0  ;;  %v86_v11 = vsel %vm85_vm2, %v80_v7, -inf }
  0xe0   :  { %87 = vmax.xlane.f32.xlu0 %v86_v11 }
 0x16d   :  { %v88_v12 = vpop.xlane.xlu0 %87 }
 0x16e   :  { %v89_v13 = vsub.f32 %v80_v7, %v88_v12 }
 0x170   :  { %v90_v14 = vmul.f32 1.442695, %v89_v13 }
 0x172   :  { %132 = vpow2.f32 %v90_v14 }
 0x17c   :  { %v133_v15 = vpop.eup %132 }
 0x17d   :  { %v92_v16 = vsel %vm85_vm2, %v133_v15, 0.0 }
 0x17e   :  { %93 = vadd.xlane.f32.xlu0 %v92_v16 }
 0x20b   :  { %v94_v17 = vpop.xlane.xlu0 %93 }
 0x20c   :  { %134 = vrcp.f32 %v94_v17 }
 0x216   :  { %v135_v18 = vpop.eup %134 }
 0x217   :  { %v96_v19 = vmul.f32 %v135_v18, %v133_v15 }
 0x219   :  { %97 = vst.msk [vmem:[#allocation2] sm:$0xff] %vm85_vm2, %v96_v19 }
 0x21a   :  { %147 = shalt.err (!%p144_p4)
}
 0x21b   :  { %s148_s22 = scalar_lea.hbm %s213_s3, 128 }
 0x21c   :  { %p149_p5 = scmp.ne.s32.totalorder %s213_s3, %s148_s22  ;;  %p152_p6 = scmp.lt.u32.totalorder %s148_s22, %s213_s3 }
 0x21e   :  { %p154_p7 = pnand %p152_p6, %p149_p5 }
 0x220   :  { %157 = shalt.err (!%p154_p7)
}
 0x221   :  { %107 = dma.vmem_to_hbm [thread:$0]  %s105_s1, 128, %s213_s3, [#allocation3]  }
 0x222   :  { %158 = dma.done.wait [#allocation3], 128  }
 0x223   :  { %159 = vsyncadd [#allocation3], 4294967168 }
 0x224   :  { %111 = vsyncpa [#allocation3], 1 }

</bundles_post_ra>
